<compile_context>
chip_gen: v5e
topology: v5e:2x2
jax: 0.10.0
libtpu: 0.0.40
codegen_flags: <defaults>
</compile_context>

<pallas_src>
import jax
import jax.numpy as jnp
from jax.experimental import pallas as pl
from jax.experimental.pallas import tpu as pltpu


def _round_up(v, m):
    return ((v + m - 1) // m) * m


def _sage_kernel(a_ref, xn_ref, xr_ref, dinv_ref, w_ref, b_ref, o_ref,
                 acc_ref):
    """One (row-tile i, neighbor-tile k) grid step.

    a_ref    : (TM, TK)      int8  un-normalized adjacency counts
    xn_ref   : (TK, H)       bf16  neighbor features (column tile k of X)
    xr_ref   : (TM, H)       bf16  root/self features (row tile i of X)
    dinv_ref : (TM, 1)       f32   1 / max(deg, 1) for row tile i
    w_ref    : (2H, O_pad)   bf16  stacked [W_l; W_r]
    b_ref    : (1, O_pad)    f32   lin_l bias
    o_ref    : (TM, O_pad)   f32   output row tile
    acc_ref  : (TM, H)       f32   VMEM accumulator for sum_j A[i,j] * x_j
    """
    k = pl.program_id(1)

    @pl.when(k == 0)
    def _():
        acc_ref[...] = jnp.zeros_like(acc_ref)

    # int8 -> bf16 upcast on the VPU (ample slack here), bf16 matmul on MXU.
    a_bf16 = a_ref[...].astype(jnp.bfloat16)
    acc_ref[...] += jnp.dot(a_bf16, xn_ref[...],
                            preferred_element_type=jnp.float32)

    @pl.when(k == pl.num_programs(1) - 1)
    def _():
        # Exact f32 mean normalization, then one fused 2H-deep bf16 matmul:
        #   [agg | x_root] @ [W_l; W_r] + b
        agg = (acc_ref[...] * dinv_ref[...]).astype(jnp.bfloat16)
        feat = jnp.concatenate([agg, xr_ref[...]], axis=-1)     # (TM, 2H)
        out = jnp.dot(feat, w_ref[...], preferred_element_type=jnp.float32)
        o_ref[...] = out + b_ref[...]


def sage_layer2(x, edge_index, w_l, w_r, b_l, *, tm=256, tk=4096):
    """x: (N, H) f32, edge_index: (2, E) int32, w_l/w_r: (H, O), b_l: (O,)."""
    n, h = x.shape
    o = w_l.shape[1]
    o_pad = _round_up(o, 128)              # lane-dense output width

    # --- tile selection ------------------------------------------------------
    # Independent row/col padding (128 granularity, no lcm blow-up); tiles are
    # chosen as the largest 128-multiples that divide the padded extents and
    # stay under the requested tm/tk.  Keep >= 2 row tiles when possible so
    # v7x's two TensorCores both get work on the "parallel" row axis.
    n_pad_r = _round_up(n, 128)
    cand_r = [d for d in range(128, min(max(tm, 128), n_pad_r) + 1, 128)
              if n_pad_r % d == 0]
    tm_eff = cand_r[-1]
    multi = [d for d in cand_r if n_pad_r // d >= 2]
    if multi:
        tm_eff = multi[-1]

    n_pad_c = _round_up(n, 128)
    cand_c = [d for d in range(128, min(max(tk, 128), n_pad_c) + 1, 128)
              if n_pad_c % d == 0]
    tk_eff = cand_c[-1]

    n_pad_x = max(n_pad_r, n_pad_c)

    # --- glue (plain JAX): int8 adjacency + exact 1/deg ----------------------
    src = edge_index[0]
    dst = edge_index[1]
    # 1-byte adjacency counts scattered directly in int8 (no f32 N^2 temp).
    # NOTE: per-(dst, src) edge multiplicities > 127 would overflow int8.
    adj_i8 = jnp.zeros((n_pad_r, n_pad_c), dtype=jnp.int8).at[dst, src].add(1)

    # Exact degrees straight from edge_index (no N^2 row-sum).
    deg = jnp.zeros((n_pad_r,), jnp.float32).at[dst].add(1.0)
    dinv = (1.0 / jnp.maximum(deg, 1.0)).reshape(n_pad_r, 1)

    # Single bf16 copy of X, used both as neighbor tiles and root tiles.
    x_bf16 = jnp.zeros((n_pad_x, h), jnp.bfloat16).at[:n].set(
        x.astype(jnp.bfloat16))

    # Stacked [W_l; W_r] -> single 2H-deep bf16 epilogue matmul.
    w_full = jnp.zeros((2 * h, o_pad), jnp.bfloat16)
    w_full = w_full.at[:h, :o].set(w_l.astype(jnp.bfloat16))
    w_full = w_full.at[h:, :o].set(w_r.astype(jnp.bfloat16))
    b_pad = jnp.zeros((1, o_pad), jnp.float32).at[0, :o].set(
        b_l.astype(jnp.float32))

    grid = (n_pad_r // tm_eff, n_pad_c // tk_eff)

    # --- VMEM budget from the actual double-buffered footprint ---------------
    vmem_bytes = (2 * tm_eff * tk_eff * 1          # A (int8)
                  + 2 * tk_eff * h * 2             # X neighbor tiles (bf16)
                  + 2 * tm_eff * h * 2             # X root tiles (bf16)
                  + 2 * tm_eff * 4                 # 1/deg
                  + 2 * 2 * h * o_pad * 2          # stacked W (bf16)
                  + 2 * o_pad * 4                  # bias
                  + 2 * tm_eff * o_pad * 4         # output tiles
                  + tm_eff * h * 4)                # f32 accumulator scratch
    vmem_limit = int(min(56 * 1024 * 1024,
                         max(16 * 1024 * 1024, 2 * vmem_bytes)))

    flops = 2 * n_pad_r * n_pad_c * h + 2 * n_pad_r * (2 * h) * o_pad
    bytes_accessed = (n_pad_r * n_pad_c                 # int8 adjacency
                      + 2 * n_pad_x * h                 # bf16 X
                      + 2 * 2 * h * o_pad + 4 * o_pad   # weights + bias
                      + 4 * n_pad_r                     # 1/deg
                      + 4 * n_pad_r * o_pad)            # output

    out = pl.pallas_call(
        _sage_kernel,
        out_shape=jax.ShapeDtypeStruct((n_pad_r, o_pad), jnp.float32),
        grid_spec=pltpu.PrefetchScalarGridSpec(
            num_scalar_prefetch=0,
            grid=grid,
            in_specs=[
                pl.BlockSpec((tm_eff, tk_eff), lambda i, k: (i, k)),  # A
                pl.BlockSpec((tk_eff, h), lambda i, k: (k, 0)),       # X (nbr)
                pl.BlockSpec((tm_eff, h), lambda i, k: (i, 0)),       # X (root)
                pl.BlockSpec((tm_eff, 1), lambda i, k: (i, 0)),       # 1/deg
                pl.BlockSpec((2 * h, o_pad), lambda i, k: (0, 0)),    # [Wl;Wr]
                pl.BlockSpec((1, o_pad), lambda i, k: (0, 0)),        # bias
            ],
            out_specs=pl.BlockSpec((tm_eff, o_pad), lambda i, k: (i, 0)),
            scratch_shapes=[pltpu.VMEM((tm_eff, h), jnp.float32)],
        ),
        compiler_params=pltpu.CompilerParams(
            dimension_semantics=("parallel", "arbitrary"),
            vmem_limit_bytes=vmem_limit,
        ),
        cost_estimate=pl.CostEstimate(
            flops=flops, transcendentals=0, bytes_accessed=bytes_accessed),
    )(adj_i8, x_bf16, x_bf16, dinv, w_full, b_pad)

    return out[:n, :o]


def _reference(x, edge_index, w_l, w_r, b_l):
    n = x.shape[0]
    src, dst = edge_index[0], edge_index[1]
    adj = jnp.zeros((n, n), dtype=jnp.float32).at[dst, src].add(1.0)
    deg = jnp.sum(adj, axis=1, keepdims=True)
    agg = (adj / jnp.maximum(deg, 1.0)) @ x
    return agg @ w_l + x @ w_r + b_l[None, :]


if __name__ == "__main__":
    key = jax.random.PRNGKey(0)
    k_x, k_e, k_wl, k_wr, k_b = jax.random.split(key, 5)

    N = 200                # number of nodes (padded to 256 inside the wrapper)
    E = 800                # number of edges
    HIDDEN = 64            # hidden_channels (SAGEConv input dim)
    OUT = 16               # out_channels   (padded to 128 lane-dense inside)

    x = jax.random.normal(k_x, (N, HIDDEN), dtype=jnp.float32)
    edge_index = jax.random.randint(k_e, (2, E), 0, N, dtype=jnp.int32)

    # Deterministic parameter init (shapes from SAGEConv(hidden, out)):
    #   lin_l: Linear(HIDDEN, OUT, bias=True)  -> W_l (HIDDEN, OUT), b_l (OUT,)
    #   lin_r: Linear(HIDDEN, OUT, bias=False) -> W_r (HIDDEN, OUT)
    scale = 1.0 / jnp.sqrt(jnp.float32(HIDDEN))
    w_l = jax.random.uniform(k_wl, (HIDDEN, OUT), minval=-scale, maxval=scale)
    w_r = jax.random.uniform(k_wr, (HIDDEN, OUT), minval=-scale, maxval=scale)
    b_l = jax.random.uniform(k_b, (OUT,), minval=-scale, maxval=scale)

    out = sage_layer2(x, edge_index, w_l, w_r, b_l)
    out = jax.block_until_ready(out)

    ref = _reference(x, edge_index, w_l, w_r, b_l)
    assert out.shape == (N, OUT)
    # bf16 feature/weight path on the MXU: allow ~1e-2-level drift (intentional).
    assert jnp.allclose(out, ref, atol=5e-2, rtol=5e-2), float(
        jnp.max(jnp.abs(out - ref)))

    print("KERNEL_OK")
</pallas_src>

<mosaic_0001>
module attributes {stable_mosaic.version = 11 : i64} {
  func.func @_sage_kernel(%arg0: i32, %arg1: i32, %arg2: memref<128x256xi8, #tpu.memory_space<vmem>>, %arg3: memref<256x64xbf16, #tpu.memory_space<vmem>>, %arg4: memref<128x64xbf16, #tpu.memory_space<vmem>>, %arg5: memref<128x1xf32, #tpu.memory_space<vmem>>, %arg6: memref<128x128xbf16, #tpu.memory_space<vmem>>, %arg7: memref<1x128xf32, #tpu.memory_space<vmem>>, %arg8: memref<128x128xf32, #tpu.memory_space<vmem>>, %arg9: memref<128x64xf32, #tpu.memory_space<vmem>>) attributes {dimension_semantics = [#tpu.dimension_semantics<parallel>, #tpu.dimension_semantics<arbitrary>], iteration_bounds = array<i64: 2, 1>, scalar_prefetch = 0 : i64, scratch_operands = 1 : i64, tpu.core_type = #tpu.core_type<tc>, window_params = [{transform_indices = @transform_0, window_bounds = array<i64: 128, 256>}, {transform_indices = @transform_1, window_bounds = array<i64: 256, 64>}, {transform_indices = @transform_2, window_bounds = array<i64: 128, 64>}, {transform_indices = @transform_3, window_bounds = array<i64: 128, 1>}, {pipeline_mode = #tpu.pipeline_mode<synchronous>, transform_indices = @transform_4, window_bounds = array<i64: 128, 128>}, {pipeline_mode = #tpu.pipeline_mode<synchronous>, transform_indices = @transform_5, window_bounds = array<i64: 1, 128>}, {transform_indices = @transform_6, window_bounds = array<i64: 128, 128>}]} {
    %c0_i32 = arith.constant 0 : i32
    %0 = arith.cmpi eq, %arg1, %c0_i32 : i32
    %1 = arith.extui %0 : i1 to i32
    %c0_i32_0 = arith.constant 0 : i32
    %2 = arith.cmpi ne, %1, %c0_i32_0 : i32
    scf.if %2 {
      %cst_10 = arith.constant 0.000000e+00 : f32
      %13 = vector.broadcast %cst_10 : f32 to vector<128x64xf32>
      %c0_11 = arith.constant 0 : index
      %c0_12 = arith.constant 0 : index
      %14 = vector.load %arg9[%c0_11, %c0_12] : memref<128x64xf32, #tpu.memory_space<vmem>>, vector<128x64xf32>
      tpu.vector_store %arg9[%c0_11, %c0_12], %13 {strides = array<i32>} : memref<128x64xf32, #tpu.memory_space<vmem>>, vector<128x64xf32>,
    } else {
    }
    %c0 = arith.constant 0 : index
    %c0_1 = arith.constant 0 : index
    %3 = vector.load %arg2[%c0, %c0_1] : memref<128x256xi8, #tpu.memory_space<vmem>>, vector<128x256xi8>
    %4 = arith.sitofp %3 : vector<128x256xi8> to vector<128x256xbf16>
    %c0_2 = arith.constant 0 : index
    %c0_3 = arith.constant 0 : index
    %5 = vector.load %arg9[%c0_2, %c0_3] : memref<128x64xf32, #tpu.memory_space<vmem>>, vector<128x64xf32>
    %c0_4 = arith.constant 0 : index
    %c0_5 = arith.constant 0 : index
    %6 = vector.load %arg3[%c0_4, %c0_5] : memref<256x64xbf16, #tpu.memory_space<vmem>>, vector<256x64xbf16>
    %cst = arith.constant dense<0.000000e+00> : vector<128x64xf32>
    %7 = tpu.matmul %4, %6, %cst {dimension_numbers = #tpu.dot_dimension_numbers<[1], [0], [0], [1], [0, 0, 1, 1], [], []>} : vector<128x256xbf16>, vector<256x64xbf16>, vector<128x64xf32> -> vector<128x64xf32>
    %8 = arith.addf %5, %7 : vector<128x64xf32>
    %c0_6 = arith.constant 0 : index
    %c0_7 = arith.constant 0 : index
    %9 = vector.load %arg9[%c0_6, %c0_7] : memref<128x64xf32, #tpu.memory_space<vmem>>, vector<128x64xf32>
    tpu.vector_store %arg9[%c0_6, %c0_7], %8 {strides = array<i32>} : memref<128x64xf32, #tpu.memory_space<vmem>>, vector<128x64xf32>,
    %c0_i32_8 = arith.constant 0 : i32
    %10 = arith.cmpi eq, %arg1, %c0_i32_8 : i32
    %11 = arith.extui %10 : i1 to i32
    %c0_i32_9 = arith.constant 0 : i32
    %12 = arith.cmpi ne, %11, %c0_i32_9 : i32
    scf.if %12 {
      %c0_10 = arith.constant 0 : index
      %c0_11 = arith.constant 0 : index
      %13 = vector.load %arg9[%c0_10, %c0_11] : memref<128x64xf32, #tpu.memory_space<vmem>>, vector<128x64xf32>
      %c0_12 = arith.constant 0 : index
      %c0_13 = arith.constant 0 : index
      %14 = vector.load %arg5[%c0_12, %c0_13] : memref<128x1xf32, #tpu.memory_space<vmem>>, vector<128x1xf32>
      %15 = vector.broadcast %14 : vector<128x1xf32> to vector<128x64xf32>
      %16 = arith.mulf %13, %15 : vector<128x64xf32>
      %17 = arith.truncf %16 : vector<128x64xf32> to vector<128x64xbf16>
      %c0_14 = arith.constant 0 : index
      %c0_15 = arith.constant 0 : index
      %18 = vector.load %arg4[%c0_14, %c0_15] : memref<128x64xbf16, #tpu.memory_space<vmem>>, vector<128x64xbf16>
      %19 = tpu.concatenate %17, %18 in 1 : vector<128x64xbf16>, vector<128x64xbf16> -> vector<128x128xbf16>
      %c0_16 = arith.constant 0 : index
      %c0_17 = arith.constant 0 : index
      %20 = vector.load %arg6[%c0_16, %c0_17] : memref<128x128xbf16, #tpu.memory_space<vmem>>, vector<128x128xbf16>
      %cst_18 = arith.constant dense<0.000000e+00> : vector<128x128xf32>
      %21 = tpu.matmul %19, %20, %cst_18 {dimension_numbers = #tpu.dot_dimension_numbers<[1], [0], [0], [1], [0, 0, 1, 1], [], []>} : vector<128x128xbf16>, vector<128x128xbf16>, vector<128x128xf32> -> vector<128x128xf32>
      %c0_19 = arith.constant 0 : index
      %c0_20 = arith.constant 0 : index
      %22 = vector.load %arg7[%c0_19, %c0_20] : memref<1x128xf32, #tpu.memory_space<vmem>>, vector<1x128xf32>
      %23 = vector.broadcast %22 : vector<1x128xf32> to vector<128x128xf32>
      %24 = arith.addf %21, %23 : vector<128x128xf32>
      %c0_21 = arith.constant 0 : index
      %c0_22 = arith.constant 0 : index
      %25 = vector.load %arg8[%c0_21, %c0_22] : memref<128x128xf32, #tpu.memory_space<vmem>>, vector<128x128xf32>
      tpu.vector_store %arg8[%c0_21, %c0_22], %24 {strides = array<i32>} : memref<128x128xf32, #tpu.memory_space<vmem>>, vector<128x128xf32>,
    } else {
    }
    return
  }
  func.func @transform_0(%arg0: i32, %arg1: i32) -> (i32, i32) {
    %c0_i32 = arith.constant 0 : i32
    return %arg0, %arg1 : i32, i32
  }
  func.func @transform_1(%arg0: i32, %arg1: i32) -> (i32, i32) {
    %c0_i32 = arith.constant 0 : i32
    %c0_i32_0 = arith.constant 0 : i32
    return %arg1, %c0_i32 : i32, i32
  }
  func.func @transform_2(%arg0: i32, %arg1: i32) -> (i32, i32) {
    %c0_i32 = arith.constant 0 : i32
    %c0_i32_0 = arith.constant 0 : i32
    return %arg0, %c0_i32 : i32, i32
  }
  func.func @transform_3(%arg0: i32, %arg1: i32) -> (i32, i32) {
    %c0_i32 = arith.constant 0 : i32
    %c0_i32_0 = arith.constant 0 : i32
    return %arg0, %c0_i32 : i32, i32
  }
  func.func @transform_4(%arg0: i32, %arg1: i32) -> (i32, i32) {
    %c0_i32 = arith.constant 0 : i32
    %c0_i32_0 = arith.constant 0 : i32
    %c0_i32_1 = arith.constant 0 : i32
    return %c0_i32, %c0_i32_0 : i32, i32
  }
  func.func @transform_5(%arg0: i32, %arg1: i32) -> (i32, i32) {
    %c0_i32 = arith.constant 0 : i32
    %c0_i32_0 = arith.constant 0 : i32
    %c0_i32_1 = arith.constant 0 : i32
    return %c0_i32, %c0_i32_0 : i32, i32
  }
  func.func @transform_6(%arg0: i32, %arg1: i32) -> (i32, i32) {
    %c0_i32 = arith.constant 0 : i32
    %c0_i32_0 = arith.constant 0 : i32
    return %arg0, %c0_i32 : i32, i32
  }
}

</mosaic_0001>

<bundles_post_ra>
// kernel: tpu_custom_call.1
= control target key start
LH: loop header
LB: loop body
LE: loop exit
PB: predicated region body
PF: predicated region fallthrough
CT: control target
= control target key end

     0   :  { %11 = vsyncpa [#allocation4], 0  ;;  %s2039_s0 = inlined_call_operand.vmem [shape: s8[256,256], index: 0, kind: input, shape index: {}]   ;;  %s2040_s1 = inlined_call_operand.vmem [shape: bf16[256,64], index: 1, kind: input, shape index: {}]   ;;  %s2041_s2 = inlined_call_operand.vmem [shape: bf16[256,64], index: 2, kind: input, shape index: {}]   ;;  %s2042_s3 = inlined_call_operand.vmem [shape: f32[256,1], index: 3, kind: input, shape index: {}]   ;;  %s2043_s4 = inlined_call_operand.vmem [shape: bf16[128,128], index: 4, kind: input, shape index: {}]   ;;  %s2044_s5 = inlined_call_operand.vmem [shape: f32[1,128], index: 5, kind: input, shape index: {}]   ;;  %s2045_s6 = inlined_call_operand.hbm [shape: f32[256,128], index: 6, kind: output, shape index: {}]  }
   0x1   :  { %13 = vsyncpa [#allocation4 + $0x1], 0  ;;  %s1678_s21 = smov 0   ;;  %s1680_s22 = smov 0  }
   0x2   :  { %s1682_s23 = smov 0   ;;  %s1684_s24 = smov 0  }
   0x3   :  { %s1686_s25 = smov 0   ;;  %s1688_s26 = smov 0  }
   0x4 LB: > { %s1289_s27 = sadd.s32 4294967295, %s1636_s26   ;;  %s1290_s28 = sadd.s32 4294967294, %s1636_s26   ;;  %s1636_s26 = sphi %s1688_s26, %s19_s26   ;;  %s1632_s25 = sphi %s1686_s25, %s2052_s25   ;;  %s1628_s24 = sphi %s1684_s24, %s2051_s24   ;;  %s1624_s23 = sphi %s1682_s23, %s2050_s23   ;;  %s1620_s22 = sphi %s1680_s22, %s2049_s22   ;;  %s1616_s21 = sphi %s1678_s21, %s2048_s21  }
   0x5   : > { %s31_s29 = sadd.s32 1, %s1632_s25  ;;  %s186_s30 = sadd.s32 1, %s1624_s23 }
   0x6   : > { %p33_p0 = scmp.ge.s32.totalorder %s31_s29, 2  ;;  %p196_p1 = scmp.ne.s32.totalorder %s1624_s23, %s1620_s22 }
   0x7   : > { %p197_p2 = scmp.eq.s32.totalorder %s1289_s27, 1  ;;  %p202_p3 = scmp.ne.s32.totalorder %s1620_s22, %s1616_s21 }
   0x8   : > { %s2054_s29 = smov (%p33_p0, %s31_s29), 0  ;;  %p203_p5 = scmp.eq.s32.totalorder %s1290_s28, 1 }
   0x9   : > { %p1718_p4 = por %p197_p2, %p196_p1  ;;  %s183_s8 = ssub.s32 %s1632_s25, %s2054_s29 }
   0xa   : > { %p1294_p6 = scmp.ge.s32.totalorder %s1636_s26, 1  ;;  %p184_p7 = scmp.eq.s32.totalorder %s183_s8, 0 }
   0xb   : > { %p1725_p8 = por %p203_p5, %p202_p3  ;;  %p269_p9 = scmp.lt.s32.totalorder %s1636_s26, 3 }
   0xc   : > { %s1731_s10 = scalar_select %p184_p7, %s1624_s23, %s186_s30  }
   0xd   : > { %p270_p10 = pnand %p1294_p6, %p269_p9 }
   0xe   : > { %s1299_s15 = sshll.u32 (!%p270_p10), %s1628_s24, 4  ;;  %s1296_s16 = sshll.u32 (!%p270_p10), %s1628_s24, 2 }
   0xf   : > { %273 = sbr.rel (%p270_p10) target bundleno = 435 (0x1b3), region = 44  ;;  %p338_p11 = scmp.lt.s32.totalorder (!%p270_p10), %s1299_s15, 31 }
  0x10   : > { %p321_p12 = scmp.lt.s32.totalorder (!%p270_p10), %s1296_s16, 7  ;;  %s1639_s8 = smov (!%p270_p10), 64  }
  0x11   : > { %s1469_s14 = sshll.u32 (!%p270_p10), %s1628_s24, 7  ;;  %s1578_s30 = scalar_lea.hbm (!%p270_p10), %s2045_s6, 256 }
  0x12   : > { %s1170_s19 = scalar_lea.hbm (!%p270_p10), %s2045_s6, %s1469_s14 }
  0x14   : > { %v1444_v0 = vld [vmem:[%s2040_s1 + $0x38] sm:$0xff]  ;;  %v1638_v2 = vmov 0   ;;  %v1443_v3 = vld [vmem:[%s2040_s1 + $0x30] sm:$0xff]  ;;  %s2056_s15 = smov (!%p338_p11, %s1299_s15), 31  ;;  %v1442_v5 = vld [vmem:[%s2040_s1 + $0x28] sm:$0xff]  ;;  %s2058_s16 = smov (!%p321_p12, %s1296_s16), 7 }
  0x15   : > { %v1739_v1 = vld [vmem:[%s2040_s1 + $0x78] sm:$0xff]  ;;  %1554 = vset.pattern.permute.xlu0 %v1638_v2  ;;  %1555 = vset.pattern.permute.xlu1 %v1638_v2  ;;  %v1750_v4 = vld [vmem:[%s2040_s1 + $0x70] sm:$0xff]  ;;  %s1302_s27 = sshll.u32 %s2056_s15, 3  ;;  %s1300_s28 = sshll.u32 %s2056_s15, 2  ;;  %v1770_v7 = vld [vmem:[%s2040_s1 + $0x68] sm:$0xff]  ;;  %vm354_vm0 = vcmask 523264  }
  0x16   : > { %603 = vmatpush.bf16.msra.mxu0 %v1444_v0  ;;  %1470 = vmatpush.bf16.msra.mxu3 %v1444_v0  ;;  %s1755_s11 = scalar_lea.vmem %s2042_s3, %s1302_s27  ;;  %s1763_s18 = scalar_lea.vmem %s2041_s2, %s1300_s28  ;;  %v1441_v9 = vld [vmem:[%s2040_s1 + $0x20] sm:$0xff]  ;;  %v1440_v12 = vld [vmem:[%s2040_s1 + $0x18] sm:$0xff]  ;;  %v1439_v15 = vld [vmem:[%s2040_s1 + $0x10] sm:$0xff] }
  0x17   : > { %652 = vmatpush.bf16.msra.mxu1 %v1739_v1  ;;  %1556 = vset.pattern.permute.xlu2 %v1638_v2  ;;  %v753_v6 = vld [vmem:[%s1755_s11] sm:$0xff]  ;;  %s1436_s12 = sshll.u32 %s2058_s16, 4  ;;  %v754_v11 = vld [vmem:[%s1755_s11 + $0x8] sm:$0xff]  ;;  %v1791_v13 = vld [vmem:[%s2040_s1 + $0x58] sm:$0xff]  ;;  %s1173_s16 = sshll.u32 %s1170_s19, 4  ;;  %s1174_s16 = int_to_ptr.hbm [resolvable:$true] %s1173_s16 }
  0x18   : > { %771 = vperm.xlu0 %1554, %v753_v6   ;;  %v1453_v8 = vld [vmem:[%s1763_s18] sm:$0xff]  ;;  %s1796_s27 = scalar_lea.vmem %s2039_s0, %s1436_s12  ;;  %v755_v14 = vld [vmem:[%s1755_s11 + $0x10] sm:$0xff]  ;;  %v1438_v25 = vld [vmem:[%s2040_s1 + $0x8] sm:$0xff] }
  0x19   : > { %v1780_v10 = vld [vmem:[%s2040_s1 + $0x60] sm:$0xff]  ;;  %977 = vrot.lane.b32.xlu1 %v1453_v8, %s1639_s8  ;;  %v1806_v17 = vld [vmem:[%s1796_s27 + $0x30] sm:$0xff]  ;;  %v1815_v19 = vld [vmem:[%s1796_s27 + $0x8] sm:$0xff] }
  0x1a   : > { %604 = vmatpush.bf16.msra.mxu0 %v1443_v3  ;;  %1471 = vmatpush.bf16.msra.mxu3 %v1443_v3  ;;  %v1803_v16 = vld [vmem:[%s1796_s27] sm:$0xff]  ;;  %v1812_v18 = vld [vmem:[%s2040_s1 + $0x50] sm:$0xff]  ;;  %v403_v23 = vunpack.c.0.s8 %v1806_v17  ;;  %v405_v24 = vunpack.c.1.s8 %v1806_v17  ;;  %v380_v26 = vunpack.c.0.s8 %v1815_v19  ;;  %v382_v27 = vunpack.c.1.s8 %v1815_v19  ;;  %v1831_v28 = vld [vmem:[%s2040_s1 + $0x48] sm:$0xff] }
  0x1b   : > { %653 = vmatpush.bf16.msra.mxu1 %v1750_v4  ;;  %v757_v20 = vld [vmem:[%s1755_s11 + $0x20] sm:$0xff]  ;;  %v379_v21 = vunpack.c.0.s8 %v1803_v16  ;;  %v381_v22 = vunpack.c.1.s8 %v1803_v16  ;;  %v758_v29 = vld [vmem:[%s1755_s11 + $0x28] sm:$0xff]  ;;  %v756_v30 = vld [vmem:[%s1755_s11 + $0x18] sm:$0xff]  ;;  %v383_v46 = vunpack.c.2.s8 %v1803_v16  ;;  %v385_v47 = vunpack.c.3.s8 %v1803_v16 }
  0x1c   : > { %v435_v33 = vcvt.s32.f32 %v403_v23  ;;  %v437_v34 = vcvt.s32.f32 %v405_v24  ;;  %786 = vperm.xlu2 %1556, %v756_v30   ;;  %v1437_v35 = vld [vmem:[%s2040_s1] sm:$0xff]  ;;  %v412_v36 = vcvt.s32.f32 %v380_v26  ;;  %v414_v37 = vcvt.s32.f32 %v382_v27  ;;  %v759_v39 = vld [vmem:[%s1755_s11 + $0x30] sm:$0xff]  ;;  %v1454_v43 = vld [vmem:[%s1763_s18 + $0x8] sm:$0xff] }
  0x1d   : > { %v411_v31 = vcvt.s32.f32 %v379_v21  ;;  %v413_v32 = vcvt.s32.f32 %v381_v22  ;;  %v1842_v38 = vld [vmem:[%s2040_s1 + $0x40] sm:$0xff]  ;;  %v760_v44 = vld [vmem:[%s1755_s11 + $0x38] sm:$0xff]  ;;  %v407_v48 = vunpack.c.2.s8 %v1806_v17  ;;  %v409_v49 = vunpack.c.3.s8 %v1806_v17  ;;  %v1455_v52 = vld [vmem:[%s1763_s18 + $0x10] sm:$0xff] }
  0x1e   : > { %605 = vmatpush.bf16.msra.mxu0 %v1442_v5  ;;  %1472 = vmatpush.bf16.msra.mxu3 %v1442_v5  ;;  %v455_v41 = vpack.c.bf16 %v437_v34, %v435_v33  ;;  %v444_v42 = vpack.c.bf16 %v414_v37, %v412_v36  ;;  %v761_v45 = vld [vmem:[%s1755_s11 + $0x40] sm:$0xff]  ;;  %v384_v50 = vunpack.c.2.s8 %v1815_v19  ;;  %v386_v51 = vunpack.c.3.s8 %v1815_v19  ;;  %v762_v53 = vld [vmem:[%s1755_s11 + $0x48] sm:$0xff]  ;;  %v1456_v0 = vld [vmem:[%s1763_s18 + $0x18] sm:$0xff] }
  0x1f   : > { %654 = vmatpush.bf16.msra.mxu1 %v1770_v7  ;;  %v443_v40 = vpack.c.bf16 %v413_v32, %v411_v31  ;;  %v415_v54 = vcvt.s32.f32 %v383_v46  ;;  %v417_v55 = vcvt.s32.f32 %v385_v47  ;;  %v439_v56 = vcvt.s32.f32 %v407_v48  ;;  %v766_v60 = vld [vmem:[%s1755_s11 + $0x68] sm:$0xff]  ;;  %v373_v2 = vld [vmem:[%s1796_s27 + $0x10] sm:$0xff]  ;;  %v378_v3 = vld [vmem:[%s1796_s27 + $0x38] sm:$0xff] }
  0x20   : > { %776 = vperm.xlu0 %1554, %v754_v11   ;;  %v441_v57 = vcvt.s32.f32 %v409_v49  ;;  %v416_v58 = vcvt.s32.f32 %v384_v50  ;;  %v418_v59 = vcvt.s32.f32 %v386_v51  ;;  %v763_v5 = vld [vmem:[%s1755_s11 + $0x50] sm:$0xff]  ;;  %v387_v6 = vunpack.c.0.s8 %v373_v2 }
  0x21   : > { %781 = vperm.xlu1 %1555, %v755_v14   ;;  %v445_v61 = vpack.c.bf16 %v417_v55, %v415_v54  ;;  %v404_v8 = vunpack.c.0.s8 %v378_v3  ;;  %v1459_v24 = vld [vmem:[%s1763_s18 + $0x30] sm:$0xff]  ;;  %v393_v26 = vunpack.c.3.s8 %v373_v2  ;;  %v408_v27 = vunpack.c.2.s8 %v378_v3 }
  0x22   : > { %606 = vmatpush.bf16.msra.mxu0 %v1441_v9  ;;  %1473 = vmatpush.bf16.msra.mxu3 %v1441_v9  ;;  %v457_v62 = vpack.c.bf16 %v441_v57, %v439_v56  ;;  %v446_v63 = vpack.c.bf16 %v418_v59, %v416_v58  ;;  %v406_v9 = vunpack.c.1.s8 %v378_v3  ;;  %v419_v14 = vcvt.s32.f32 %v387_v6  ;;  %v767_v31 = vld [vmem:[%s1755_s11 + $0x70] sm:$0xff]  ;;  %v1464_v6 = vld [vmem:[%s2043_s4 + $0x18] sm:$0xff] }
  0x23   : > { %655 = vmatpush.bf16.msra.mxu1 %v1780_v10  ;;  %v436_v16 = vcvt.s32.f32 %v404_v8  ;;  %v425_v33 = vcvt.s32.f32 %v393_v26  ;;  %v440_v34 = vcvt.s32.f32 %v408_v27  ;;  %v1462_v8 = vld [vmem:[%s2043_s4 + $0x8] sm:$0xff] }
  0x24   : > { %979 = vrot.lane.b32.xlu2 %v1454_v43, %s1639_s8  ;;  %v438_v17 = vcvt.s32.f32 %v406_v9  ;;  %v1461_v9 = vld [vmem:[%s2043_s4] sm:$0xff] }
  0x26   : > { %607 = vmatpush.bf16.msra.mxu0 %v1440_v12  ;;  %1474 = vmatpush.bf16.msra.mxu3 %v1440_v12  ;;  %v765_v12 = vld [vmem:[%s1755_s11 + $0x60] sm:$0xff]  ;;  %v456_v22 = vpack.c.bf16 %v438_v17, %v436_v16 }
  0x27   : > { %656 = vmatpush.bf16.msra.mxu1 %v1791_v13 }
  0x28   : > { %791 = vperm.xlu0 %1554, %v757_v20   ;;  %v768_v20 = vld [vmem:[%s1755_s11 + $0x78] sm:$0xff] }
  0x29   : > { %796 = vperm.xlu1 %1555, %v758_v29  }
  0x2a   : > { %608 = vmatpush.bf16.msra.mxu0 %v1439_v15  ;;  %1475 = vmatpush.bf16.msra.mxu3 %v1439_v15 }
  0x2b   : > { %657 = vmatpush.bf16.msra.mxu1 %v1812_v18 }
  0x2c   : > { %981 = vrot.lane.b32.xlu2 %v1455_v52, %s1639_s8 }
  0x2e   : > { %609 = vmatpush.bf16.msra.mxu0 %v1438_v25  ;;  %1476 = vmatpush.bf16.msra.mxu3 %v1438_v25  ;;  %v391_v25 = vunpack.c.2.s8 %v373_v2 }
  0x2f   : > { %658 = vmatpush.bf16.msra.mxu1 %v1831_v28 }
  0x30   : > { %801 = vperm.xlu0 %1554, %v759_v39   ;;  %v423_v32 = vcvt.s32.f32 %v391_v25 }
  0x31   : > { %806 = vperm.xlu1 %1555, %v760_v44  }
  0x32   : > { %610 = vmatpush.bf16.msra.mxu0 %v1437_v35  ;;  %1477 = vmatpush.bf16.msra.mxu3 %v1437_v35 }
  0x33   : > { %659 = vmatpush.bf16.msra.mxu1 %v1842_v38 }
  0x34   : > { %983 = vrot.lane.b32.xlu2 %v1456_v0, %s1639_s8  ;;  %v1458_v0 = vld [vmem:[%s1763_s18 + $0x28] sm:$0xff] }
  0x35   : > { %611 = vmatmul.bf16.vlgmr.msra.gmra.mxu0 %v443_v40  ;;  %641 = vmatmul.bf16.vlgmr.msra.gmra.mxu3 %v455_v41  ;;  %v375_v41 = vld [vmem:[%s1796_s27 + $0x20] sm:$0xff] }
  0x36   : > { %1478 = vmatpush.bf16.msrb.mxu3 %v1739_v1  ;;  %660 = vmatmul.bf16.vlgmr.msra.gmra.mxu1 %v444_v42  ;;  %v1457_v1 = vld [vmem:[%s1763_s18 + $0x20] sm:$0xff]  ;;  %v376_v42 = vld [vmem:[%s1796_s27 + $0x28] sm:$0xff]  ;;  %v395_v43 = vunpack.c.0.s8 %v375_v41  ;;  %v397_v44 = vunpack.c.1.s8 %v375_v41  ;;  %v401_v54 = vunpack.c.3.s8 %v375_v41 }
  0x37   : > { %v398_v46 = vunpack.c.1.s8 %v376_v42  ;;  %v400_v55 = vunpack.c.2.s8 %v376_v42  ;;  %v402_v56 = vunpack.c.3.s8 %v376_v42 }
  0x38   : > { %811 = vperm.xlu0 %1554, %v761_v45   ;;  %v396_v45 = vunpack.c.0.s8 %v376_v42  ;;  %v427_v47 = vcvt.s32.f32 %v395_v43  ;;  %v429_v48 = vcvt.s32.f32 %v397_v44  ;;  %v433_v58 = vcvt.s32.f32 %v401_v54 }
  0x39   : > { %816 = vperm.xlu1 %1555, %v762_v53   ;;  %v430_v50 = vcvt.s32.f32 %v398_v46  ;;  %v399_v53 = vunpack.c.2.s8 %v375_v41  ;;  %v432_v59 = vcvt.s32.f32 %v400_v55 }
  0x3a   : > { %1479 = vmatpush.bf16.msrb.mxu3 %v1750_v4  ;;  %v374_v4 = vld [vmem:[%s1796_s27 + $0x18] sm:$0xff]  ;;  %v428_v49 = vcvt.s32.f32 %v396_v45  ;;  %v451_v51 = vpack.c.bf16 %v429_v48, %v427_v47 }
  0x3b   : > { %v390_v11 = vunpack.c.1.s8 %v374_v4  ;;  %v392_v29 = vunpack.c.2.s8 %v374_v4  ;;  %v394_v30 = vunpack.c.3.s8 %v374_v4  ;;  %v431_v57 = vcvt.s32.f32 %v399_v53 }
  0x3c   : > { %831 = vperm.xlu2 %1556, %v765_v12   ;;  %v452_v52 = vpack.c.bf16 %v430_v50, %v428_v49 }
  0x3d   : > { %v422_v19 = vcvt.s32.f32 %v390_v11  ;;  %v424_v36 = vcvt.s32.f32 %v392_v29  ;;  %v426_v37 = vcvt.s32.f32 %v394_v30 }
  0x3e   : > { %1480 = vmatpush.bf16.msrb.mxu3 %v1770_v7  ;;  %v389_v7 = vunpack.c.1.s8 %v373_v2  ;;  %v1640_v2 = vmov 0.0  }
  0x3f   : > { %v450_v40 = vpack.c.bf16 %v426_v37, %v424_v36  ;;  %355 = vst.msk [vmem:[#allocation2] sm:$0xff] %vm354_vm0, %v1640_v2 }
  0x40   : > { %836 = vperm.xlu0 %1554, %v766_v60   ;;  %v421_v15 = vcvt.s32.f32 %v389_v7  ;;  %v434_v60 = vcvt.s32.f32 %v402_v56  ;;  %356 = vst.msk [vmem:[#allocation2 + $0x8] sm:$0xff] %vm354_vm0, %v1640_v2  ;;  %v1463_v7 = vld [vmem:[%s2043_s4 + $0x10] sm:$0xff] }
  0x41   : > { %985 = vrot.lane.b32.xlu1 %v1457_v1, %s1639_s8  ;;  %v1468_v1 = vld [vmem:[%s2043_s4 + $0x38] sm:$0xff]  ;;  %357 = vst.msk [vmem:[#allocation2 + $0x10] sm:$0xff] %vm354_vm0, %v1640_v2 }
  0x42   : > { %1481 = vmatpush.bf16.msrb.mxu3 %v1780_v10  ;;  %v388_v10 = vunpack.c.0.s8 %v374_v4  ;;  %v447_v21 = vpack.c.bf16 %v421_v15, %v419_v14  ;;  %1093 = vmatpush.bf16.msra.mxu2 %v1468_v1  ;;  %358 = vst.msk [vmem:[#allocation2 + $0x18] sm:$0xff] %vm354_vm0, %v1640_v2  ;;  %v1466_v4 = vld [vmem:[%s2043_s4 + $0x28] sm:$0xff] }
  0x43   : > { %359 = vst.msk [vmem:[#allocation2 + $0x20] sm:$0xff] %vm354_vm0, %v1640_v2 }
  0x44   : > { %989 = vrot.lane.b32.xlu2 %v1459_v24, %s1639_s8  ;;  %360 = vst.msk [vmem:[#allocation2 + $0x28] sm:$0xff] %vm354_vm0, %v1640_v2 }
  0x45   : > { %616 = vmatmul.bf16.gmra.mxu0 %v445_v61  ;;  %646 = vmatmul.bf16.gmra.mxu3 %v457_v62  ;;  %v453_v61 = vpack.c.bf16 %v433_v58, %v431_v57  ;;  %v454_v62 = vpack.c.bf16 %v434_v60, %v432_v59  ;;  %361 = vst.msk [vmem:[#allocation2 + $0x30] sm:$0xff] %vm354_vm0, %v1640_v2 }
  0x46   : > { %1482 = vmatpush.bf16.msrb.mxu3 %v1791_v13  ;;  %665 = vmatmul.bf16.gmra.mxu1 %v446_v63  ;;  %v764_v13 = vld [vmem:[%s1755_s11 + $0x58] sm:$0xff]  ;;  %362 = vst.msk [vmem:[#allocation2 + $0x38] sm:$0xff] %vm354_vm0, %v1640_v2  ;;  %v459_v11 = vld [vmem:[#allocation2] sm:$0xff]  ;;  %s1572_s11 = sshra.s32 %s1174_s16, 4  ;;  %s1573_s11 = int_to_ptr.hbm [resolvable:$true] %s1572_s11 }
  0x47   : > { %v1460_v63 = vld [vmem:[%s1763_s18 + $0x38] sm:$0xff]  ;;  %363 = vst.msk [vmem:[#allocation2 + $0x40] sm:$0xff] %vm354_vm0, %v1640_v2  ;;  %s316_s18 = sand.u32 1, %s1620_s22   ;;  %s1574_s24 = scalar_lea.hbm %s1573_s11, 128 }
  0x48   : > { %821 = vperm.xlu0 %1554, %v763_v5   ;;  %364 = vst.msk [vmem:[#allocation2 + $0x48] sm:$0xff] %vm354_vm0, %v1640_v2  ;;  %v1465_v5 = vld [vmem:[%s2043_s4 + $0x20] sm:$0xff]  ;;  %v461_v27 = vld [vmem:[#allocation2 + $0x10] sm:$0xff]  ;;  %s1159_s28 = scalar_lea.sflag [#allocation4], %s316_s18  ;;  %p1575_p13 = scmp.ne.s32.totalorder %s1573_s11, %s1574_s24 }
  0x49   : > { %826 = vperm.xlu1 %1555, %v764_v13   ;;  %365 = vst.msk [vmem:[#allocation2 + $0x50] sm:$0xff] %vm354_vm0, %v1640_v2  ;;  %v462_v41 = vld [vmem:[#allocation2 + $0x18] sm:$0xff]  ;;  %p1579_p2 = scmp.lt.s32.totalorder %s1573_s11, %s2045_s6  ;;  %p1580_p3 = scmp.lt.s32.totalorder %s1578_s30, %s1574_s24 }
  0x4a   : > { %1483 = vmatpush.bf16.msrb.mxu3 %v1812_v18  ;;  %v420_v18 = vcvt.s32.f32 %v388_v10  ;;  %366 = vst.msk [vmem:[#allocation2 + $0x58] sm:$0xff] %vm354_vm0, %v1640_v2  ;;  %v463_v54 = vld [vmem:[#allocation2 + $0x20] sm:$0xff]  ;;  %p1576_p0 = pnand %p1575_p13, %p1718_p4 }
  0x4b   : > { %367 = vst.msk [vmem:[#allocation2 + $0x60] sm:$0xff] %vm354_vm0, %v1640_v2  ;;  %p1581_p5 = por %p1580_p3, %p1579_p2 }
  0x4c   : > { %v448_v23 = vpack.c.bf16 %v422_v19, %v420_v18  ;;  %841 = vperm.xlu2 %1556, %v767_v31   ;;  %368 = vst.msk [vmem:[#allocation2 + $0x68] sm:$0xff] %vm354_vm0, %v1640_v2  ;;  %v460_v18 = vld [vmem:[#allocation2 + $0x8] sm:$0xff]  ;;  %p1577_p1 = pneg %p1576_p0 }
  0x4d   : > { %369 = vst.msk [vmem:[#allocation2 + $0x70] sm:$0xff] %vm354_vm0, %v1640_v2 }
  0x4e   : > { %1484 = vmatpush.bf16.msrb.mxu3 %v1831_v28  ;;  %v410_v28 = vunpack.c.3.s8 %v378_v3  ;;  %v1467_v3 = vld [vmem:[%s2043_s4 + $0x30] sm:$0xff]  ;;  %370 = vst.msk [vmem:[#allocation2 + $0x78] sm:$0xff] %vm354_vm0, %v1640_v2  ;;  %p1582_p6 = pnand %p1581_p5, %p1577_p1 }
  0x4f   : > { %1094 = vmatpush.bf16.msra.mxu2 %v1467_v3 }
  0x50   : > { %846 = vperm.xlu0 %1554, %v768_v20   ;;  %v442_v35 = vcvt.s32.f32 %v410_v28 }
  0x51   : > { %987 = vrot.lane.b32.xlu1 %v1458_v0, %s1639_s8 }
  0x52   : > { %1485 = vmatpush.bf16.msrb.mxu3 %v1842_v38  ;;  %v449_v38 = vpack.c.bf16 %v425_v33, %v423_v32  ;;  %v458_v39 = vpack.c.bf16 %v442_v35, %v440_v34 }
  0x53   : > { %1095 = vmatpush.bf16.msra.mxu2 %v1466_v4 }
  0x54   : > { %991 = vrot.lane.b32.xlu2 %v1460_v63, %s1639_s8  ;;  %s1295_s8 = sshll.u32 %s316_s18, 7 }
  0x55   : > { %621 = vmatmul.bf16.gmra.mxu0 %v447_v21  ;;  %690 = vmatmul.bf16.vlgmr.msrb.gmra.mxu3 %v456_v22  ;;  %s1982_s13 = scalar_lea.vmem [#allocation3], %s1295_s8 }
  0x56   : > { %670 = vmatmul.bf16.gmra.mxu1 %v448_v23  ;;  %1486 = vmatpush.bf16.msra.mxu3 %v1468_v1  ;;  %s1171_s20 = sshll.u32 %s1982_s13, 4  ;;  %s1172_s20 = int_to_ptr.vmem [resolvable:$true] %s1171_s20 }
  0x57   : > { %1096 = vmatpush.bf16.msra.mxu2 %v1465_v5 }
  0x5a   : > { %1487 = vmatpush.bf16.msra.mxu3 %v1467_v3 }
  0x5b   : > { %1097 = vmatpush.bf16.msra.mxu2 %v1464_v6 }
  0x5e   : > { %1488 = vmatpush.bf16.msra.mxu3 %v1466_v4 }
  0x5f   : > { %1098 = vmatpush.bf16.msra.mxu2 %v1463_v7 }
  0x62   : > { %1489 = vmatpush.bf16.msra.mxu3 %v1465_v5 }
  0x63   : > { %1099 = vmatpush.bf16.msra.mxu2 %v1462_v8 }
  0x65   : > { %626 = vmatmul.bf16.gmra.mxu0 %v449_v38  ;;  %695 = vmatmul.bf16.gmra.mxu3 %v458_v39 }
  0x66   : > { %675 = vmatmul.bf16.gmra.mxu1 %v450_v40  ;;  %1490 = vmatpush.bf16.msra.mxu3 %v1464_v6  ;;  %v464_v6 = vld [vmem:[#allocation2 + $0x28] sm:$0xff] }
  0x67   : > { %1100 = vmatpush.bf16.msra.mxu2 %v1461_v9 }
  0x6a   : > { %1491 = vmatpush.bf16.msra.mxu3 %v1463_v7 }
  0x6e   : > { %1492 = vmatpush.bf16.msra.mxu3 %v1462_v8 }
  0x72   : > { %1493 = vmatpush.bf16.msra.mxu3 %v1461_v9 }
  0x75   : > { %631 = vmatmul.bf16.gmra.mxu0 %v451_v51 }
  0x76   : > { %680 = vmatmul.bf16.gmra.mxu1 %v452_v52  ;;  %v787_v20 = vpop.permute.xlu2 %786 }
  0x7e   : > { %v980_v31 = vpop.permute.xlu2 %979 }
  0x85   : > { %636 = vmatmul.bf16.gmra.mxu0 %v453_v61  ;;  %v471_v61 = vld [vmem:[#allocation2 + $0x60] sm:$0xff] }
  0x86   : > { %685 = vmatmul.bf16.gmra.mxu1 %v454_v62  ;;  %v1935_v48 = vpop.permute.xlu2 %981 }
  0x8a   : > { %v772_v14 = vpop.permute.xlu0 %771 }
  0x8b   : > { %v978_v37 = vpop.permute.xlu1 %977 }
  0x8e   : > { %v1944_v2 = vpop.permute.xlu2 %983 }
  0x92   : > { %v777_v23 = vpop.permute.xlu0 %776 }
  0x93   : > { %v782_v53 = vpop.permute.xlu1 %781 }
  0x9a   : > { %v792_v38 = vpop.permute.xlu0 %791 }
  0xa2   : > { %v1941_v56 = vpop.permute.xlu0 %801 }
  0xb2   : > { %v612_v10 = vpop.f32.mrf.mxu0 }
  0xb3   : > { %v661_v12 = vpop.f32.mrf.mxu1 }
  0xb4   : > { %v662_v13 = vadd.f32 %v661_v12, %v612_v10 }
  0xb6   : > { %v701_v15 = vadd.f32 %v662_v13, %v459_v11  ;;  %v1947_v11 = vpop.permute.xlu0 %811 }
  0xb8   : > { %718 = vst.msk [vmem:[#allocation2] sm:$0xff] %vm354_vm0, %v701_v15  ;;  %v642_v16 = vpop.f32.mrf.mxu3 }
  0xba   : > { %v614_v17 = vpop.f32.mrf.mxu0 }
  0xbb   : > { %v663_v19 = vpop.f32.mrf.mxu1 }
  0xbc   : > { %v664_v21 = vadd.f32 %v663_v19, %v614_v17 }
  0xbe   : > { %v702_v22 = vadd.f32 %v664_v21, %v460_v18  ;;  %v465_v21 = vld [vmem:[#allocation2 + $0x30] sm:$0xff] }
  0xbf   : > { %v737_v25 = vld [vmem:[#allocation2] sm:$0xff] }
  0xc0   : > { %719 = vst.msk [vmem:[#allocation2 + $0x8] sm:$0xff] %vm354_vm0, %v702_v22  ;;  %v1930_v24 = vpop.f32.mrf.mxu3  ;;  %v849_v30 = vmul.f32 %v772_v14, %v737_v25  ;;  %v472_v14 = vld [vmem:[#allocation2 + $0x68] sm:$0xff] }
  0xc2   : > { %v617_v26 = vpop.f32.mrf.mxu0  ;;  %v865_v36 = vpack.c.bf16 %v849_v30, %v849_v30 }
  0xc3   : > { %v666_v28 = vpop.f32.mrf.mxu1 }
  0xc4   : > { %v667_v29 = vadd.f32 %v666_v28, %v617_v26  ;;  %v913_v44 = vunpack.c.l.b16 %v865_v36 }
  0xc6   : > { %v703_v32 = vadd.f32 %v667_v29, %v461_v27  ;;  %v797_v29 = vpop.permute.xlu1 %796 }
  0xc7   : > { %v738_v33 = vld [vmem:[#allocation2 + $0x8] sm:$0xff] }
  0xc8   : > { %720 = vst.msk [vmem:[#allocation2 + $0x10] sm:$0xff] %vm354_vm0, %v703_v32  ;;  %v1933_v34 = vpop.f32.mrf.mxu3  ;;  %v850_v35 = vmul.f32 %v777_v23, %v738_v33  ;;  %v832_v23 = vpop.permute.xlu2 %831 }
  0xc9   : > { %v837_v32 = vpop.permute.xlu0 %836 }
  0xca   : > { %v619_v39 = vpop.f32.mrf.mxu0  ;;  %v866_v40 = vpack.c.bf16 %v850_v35, %v850_v35 }
  0xcb   : > { %v668_v42 = vpop.f32.mrf.mxu1 }
  0xcc   : > { %v669_v43 = vadd.f32 %v668_v42, %v619_v39  ;;  %v914_v45 = vunpack.c.l.b16 %v866_v40 }
  0xce   : > { %v704_v46 = vadd.f32 %v669_v43, %v462_v41  ;;  %v929_v47 = vpack.c.b16 %v914_v45, %v913_v44 }
  0xcf   : > { %v739_v51 = vld [vmem:[#allocation2 + $0x10] sm:$0xff] }
  0xd0   : > { %721 = vst.msk [vmem:[#allocation2 + $0x18] sm:$0xff] %vm354_vm0, %v704_v46  ;;  %v1938_v49 = vpop.f32.mrf.mxu3  ;;  %v995_v50 = vsel %vm354_vm0, %v929_v47, %v978_v37  ;;  %v851_v58 = vmul.f32 %v782_v53, %v739_v51  ;;  %v990_v51 = vpop.permute.xlu2 %989 }
  0xd1   : > { %1101 = vmatmul.bf16.vlgmr.msra.gmra.mxu2 %v995_v50 }
  0xd2   : > { %v622_v52 = vpop.f32.mrf.mxu0  ;;  %v867_v0 = vpack.c.bf16 %v851_v58, %v851_v58 }
  0xd3   : > { %v671_v55 = vpop.f32.mrf.mxu1 }
  0xd4   : > { %v672_v57 = vadd.f32 %v671_v55, %v622_v52  ;;  %v915_v9 = vunpack.c.l.b16 %v867_v0 }
  0xd6   : > { %v705_v59 = vadd.f32 %v672_v57, %v463_v54 }
  0xd7   : > { %v740_v60 = vld [vmem:[#allocation2 + $0x18] sm:$0xff] }
  0xd8   : > { %722 = vst.msk [vmem:[#allocation2 + $0x20] sm:$0xff] %vm354_vm0, %v705_v59  ;;  %v691_v62 = vpop.f32.mrf.mxu3  ;;  %v852_v63 = vmul.f32 %v787_v20, %v740_v60 }
  0xd9   : > { %v692_v1 = vadd.f32 %v691_v62, %v642_v16  ;;  %v1960_v62 = vpop.permute.xlu0 %821 }
  0xda   : > { %v624_v3 = vpop.f32.mrf.mxu0  ;;  %v868_v4 = vpack.c.bf16 %v852_v63, %v852_v63 }
  0xdb   : > { %v713_v5 = vadd.f32 %v692_v1, %v471_v61  ;;  %v673_v7 = vpop.f32.mrf.mxu1  ;;  %v467_v1 = vld [vmem:[#allocation2 + $0x40] sm:$0xff] }
  0xdc   : > { %v674_v8 = vadd.f32 %v673_v7, %v624_v3  ;;  %v916_v10 = vunpack.c.l.b16 %v868_v4 }
  0xdd   : > { %730 = vst.msk [vmem:[#allocation2 + $0x60] sm:$0xff] %vm354_vm0, %v713_v5 }
  0xde   : > { %v706_v12 = vadd.f32 %v674_v8, %v464_v6  ;;  %v930_v13 = vpack.c.b16 %v916_v10, %v915_v9  ;;  %v807_v8 = vpop.permute.xlu1 %806  ;;  %v842_v10 = vpop.permute.xlu2 %841 }
  0xdf   : > { %v741_v18 = vld [vmem:[#allocation2 + $0x20] sm:$0xff] }
  0xe0   : > { %723 = vst.msk [vmem:[#allocation2 + $0x28] sm:$0xff] %vm354_vm0, %v706_v12  ;;  %v693_v15 = vpop.f32.mrf.mxu3  ;;  %v999_v16 = vsel %vm354_vm0, %v930_v13, %v980_v31  ;;  %v853_v26 = vmul.f32 %v792_v38, %v741_v18  ;;  %v473_v31 = vld [vmem:[#allocation2 + $0x70] sm:$0xff]  ;;  %v466_v38 = vld [vmem:[#allocation2 + $0x38] sm:$0xff] }
  0xe1   : > { %v694_v17 = vadd.f32 %v693_v15, %v1930_v24  ;;  %1106 = vmatmul.bf16.gmra.mxu2 %v999_v16 }
  0xe2   : > { %v627_v19 = vpop.f32.mrf.mxu0  ;;  %v869_v35 = vpack.c.bf16 %v853_v26, %v853_v26 }
  0xe3   : > { %v714_v20 = vadd.f32 %v694_v17, %v472_v14  ;;  %v676_v22 = vpop.f32.mrf.mxu1  ;;  %v468_v17 = vld [vmem:[#allocation2 + $0x48] sm:$0xff] }
  0xe4   : > { %v677_v25 = vadd.f32 %v676_v22, %v627_v19  ;;  %v749_v28 = vld [vmem:[#allocation2 + $0x60] sm:$0xff]  ;;  %v917_v44 = vunpack.c.l.b16 %v869_v35 }
  0xe5   : > { %731 = vst.msk [vmem:[#allocation2 + $0x68] sm:$0xff] %vm354_vm0, %v714_v20  ;;  %v861_v37 = vmul.f32 %v832_v23, %v749_v28 }
  0xe6   : > { %v707_v27 = vadd.f32 %v677_v25, %v465_v21  ;;  %v992_v35 = vpop.permute.xlu2 %991 }
  0xe7   : > { %v742_v30 = vld [vmem:[#allocation2 + $0x28] sm:$0xff]  ;;  %v877_v50 = vpack.c.bf16 %v861_v37, %v861_v37 }
  0xe8   : > { %724 = vst.msk [vmem:[#allocation2 + $0x30] sm:$0xff] %vm354_vm0, %v707_v27  ;;  %v696_v24 = vpop.f32.mrf.mxu3  ;;  %v854_v33 = vmul.f32 %v797_v29, %v742_v30  ;;  %v817_v30 = vpop.permute.xlu1 %816 }
  0xe9   : > { %v697_v36 = vadd.f32 %v696_v24, %v1933_v34  ;;  %v474_v34 = vld [vmem:[#allocation2 + $0x78] sm:$0xff]  ;;  %v925_v59 = vunpack.c.l.b16 %v877_v50 }
  0xea   : > { %v629_v39 = vpop.f32.mrf.mxu0  ;;  %v870_v40 = vpack.c.bf16 %v854_v33, %v854_v33  ;;  %v470_v50 = vld [vmem:[#allocation2 + $0x58] sm:$0xff] }
  0xeb   : > { %v715_v41 = vadd.f32 %v697_v36, %v473_v31  ;;  %v678_v42 = vpop.f32.mrf.mxu1  ;;  %v469_v36 = vld [vmem:[#allocation2 + $0x50] sm:$0xff] }
  0xec   : > { %v679_v43 = vadd.f32 %v678_v42, %v629_v39  ;;  %v918_v45 = vunpack.c.l.b16 %v870_v40  ;;  %v750_v46 = vld [vmem:[#allocation2 + $0x68] sm:$0xff] }
  0xed   : > { %732 = vst.msk [vmem:[#allocation2 + $0x70] sm:$0xff] %vm354_vm0, %v715_v41  ;;  %v862_v47 = vmul.f32 %v837_v32, %v750_v46 }
  0xee   : > { %v708_v52 = vadd.f32 %v679_v43, %v466_v38  ;;  %v931_v53 = vpack.c.b16 %v918_v45, %v917_v44 }
  0xef   : > { %v878_v54 = vpack.c.bf16 %v862_v47, %v862_v47  ;;  %v743_v61 = vld [vmem:[#allocation2 + $0x30] sm:$0xff] }
  0xf0   : > { %725 = vst.msk [vmem:[#allocation2 + $0x38] sm:$0xff] %vm354_vm0, %v708_v52  ;;  %v698_v55 = vpop.f32.mrf.mxu3  ;;  %v1003_v57 = vsel %vm354_vm0, %v931_v53, %v1935_v48  ;;  %v855_v6 = vmul.f32 %v1941_v56, %v743_v61  ;;  %v847_v56 = vpop.permute.xlu0 %846 }
  0xf1   : > { %v699_v58 = vadd.f32 %v698_v55, %v1938_v49  ;;  %1111 = vmatmul.bf16.gmra.mxu2 %v1003_v57  ;;  %v926_v60 = vunpack.c.l.b16 %v878_v54  ;;  %v986_v47 = vpop.permute.xlu1 %985 }
  0xf2   : > { %v632_v63 = vpop.f32.mrf.mxu0  ;;  %v871_v13 = vpack.c.bf16 %v855_v6, %v855_v6 }
  0xf3   : > { %v716_v0 = vadd.f32 %v699_v58, %v474_v34  ;;  %v681_v3 = vpop.f32.mrf.mxu1  ;;  %v935_v4 = vpack.c.b16 %v926_v60, %v925_v59 }
  0xf4   : > { %v682_v5 = vadd.f32 %v681_v3, %v632_v63  ;;  %v751_v49 = vld [vmem:[#allocation2 + $0x70] sm:$0xff]  ;;  %v919_v20 = vunpack.c.l.b16 %v871_v13 }
  0xf5   : > { %733 = vst.msk [vmem:[#allocation2 + $0x78] sm:$0xff] %vm354_vm0, %v716_v0  ;;  %v1019_v48 = vsel %vm354_vm0, %v935_v4, %v990_v51  ;;  %v863_v14 = vmul.f32 %v842_v10, %v751_v49 }
  0xf6   : > { %v709_v7 = vadd.f32 %v682_v5, %v467_v1  ;;  %1131 = vmatmul.bf16.vlgmr.msra.gmra.mxu3 %v1019_v48  ;;  %v1557_v48 = vld [vmem:[%s2044_s5] ss:$0 sm:$0xff] }
  0xf7   : > { %v744_v9 = vld [vmem:[#allocation2 + $0x38] sm:$0xff]  ;;  %v879_v25 = vpack.c.bf16 %v863_v14, %v863_v14 }
  0xf8   : > { %726 = vst.msk [vmem:[#allocation2 + $0x40] sm:$0xff] %vm354_vm0, %v709_v7  ;;  %v856_v12 = vmul.f32 %v807_v8, %v744_v9 }
  0xf9   : > { %v927_v32 = vunpack.c.l.b16 %v879_v25  ;;  %v827_v59 = vpop.permute.xlu1 %826 }
  0xfa   : > { %v634_v15 = vpop.f32.mrf.mxu0  ;;  %v872_v16 = vpack.c.bf16 %v856_v12, %v856_v12 }
  0xfb   : > { %v683_v18 = vpop.f32.mrf.mxu1 }
  0xfc   : > { %v684_v19 = vadd.f32 %v683_v18, %v634_v15  ;;  %v920_v21 = vunpack.c.l.b16 %v872_v16  ;;  %v752_v22 = vld [vmem:[#allocation2 + $0x78] sm:$0xff] }
  0xfd   : > { %v864_v23 = vmul.f32 %v847_v56, %v752_v22 }
  0xfe   : > { %v710_v26 = vadd.f32 %v684_v19, %v468_v17  ;;  %v932_v27 = vpack.c.b16 %v920_v21, %v919_v20 }
  0xff   : > { %v880_v28 = vpack.c.bf16 %v864_v23, %v864_v23  ;;  %v745_v24 = vld [vmem:[#allocation2 + $0x40] sm:$0xff] }
 0x100   : > { %727 = vst.msk [vmem:[#allocation2 + $0x48] sm:$0xff] %vm354_vm0, %v710_v26  ;;  %v1007_v29 = vsel %vm354_vm0, %v932_v27, %v1944_v2  ;;  %v857_v41 = vmul.f32 %v1947_v11, %v745_v24 }
 0x101   : > { %1116 = vmatmul.bf16.gmra.mxu2 %v1007_v29  ;;  %v928_v31 = vunpack.c.l.b16 %v880_v28  ;;  %v988_v4 = vpop.permute.xlu1 %987 }
 0x102   : > { %v637_v33 = vpop.f32.mrf.mxu0  ;;  %v873_v44 = vpack.c.bf16 %v857_v41, %v857_v41 }
 0x103   : > { %v686_v37 = vpop.f32.mrf.mxu1  ;;  %v936_v39 = vpack.c.b16 %v928_v31, %v927_v32 }
 0x104   : > { %v687_v40 = vadd.f32 %v686_v37, %v637_v33  ;;  %v921_v53 = vunpack.c.l.b16 %v873_v44 }
 0x105   : > { %v1023_v38 = vsel %vm354_vm0, %v936_v39, %v992_v35 }
 0x106   : > { %v711_v42 = vadd.f32 %v687_v40, %v469_v36  ;;  %1136 = vmatmul.bf16.gmra.mxu3 %v1023_v38 }
 0x107   : > { %v746_v43 = vld [vmem:[#allocation2 + $0x48] sm:$0xff] }
 0x108   : > { %728 = vst.msk [vmem:[#allocation2 + $0x50] sm:$0xff] %vm354_vm0, %v711_v42  ;;  %v858_v2 = vmul.f32 %v817_v30, %v746_v43 }
 0x10a   : > { %v639_v45 = vpop.f32.mrf.mxu0  ;;  %v874_v46 = vpack.c.bf16 %v858_v2, %v858_v2 }
 0x10b   : > { %v688_v51 = vpop.f32.mrf.mxu1 }
 0x10c   : > { %v689_v52 = vadd.f32 %v688_v51, %v639_v45  ;;  %v922_v54 = vunpack.c.l.b16 %v874_v46 }
 0x10e   : > { %v712_v34 = vadd.f32 %v689_v52, %v470_v50  ;;  %v933_v55 = vpack.c.b16 %v922_v54, %v921_v53 }
 0x10f   : > { %v747_v57 = vld [vmem:[#allocation2 + $0x50] sm:$0xff] }
 0x110   : > { %729 = vst.msk [vmem:[#allocation2 + $0x58] sm:$0xff] %vm354_vm0, %v712_v34  ;;  %v1011_v11 = vsel %vm354_vm0, %v933_v55, %v986_v47  ;;  %v859_v58 = vmul.f32 %v1960_v62, %v747_v57 }
 0x111   : > { %1121 = vmatmul.bf16.gmra.mxu2 %v1011_v11 }
 0x112   : > { %v875_v63 = vpack.c.bf16 %v859_v58, %v859_v58 }
 0x114   : > { %v923_v1 = vunpack.c.l.b16 %v875_v63 }
 0x117   : > { %v748_v60 = vld [vmem:[#allocation2 + $0x58] sm:$0xff] }
 0x118   : > { %v860_v61 = vmul.f32 %v827_v59, %v748_v60 }
 0x11a   : > { %v876_v0 = vpack.c.bf16 %v860_v61, %v860_v61 }
 0x11c   : > { %v924_v3 = vunpack.c.l.b16 %v876_v0 }
 0x11e   : > { %v934_v5 = vpack.c.b16 %v924_v3, %v923_v1 }
 0x120   : > { %v1015_v6 = vsel %vm354_vm0, %v934_v5, %v988_v4 }
 0x121   : > { %1126 = vmatmul.bf16.gmra.mxu2 %v1015_v6 }
 0x154   : > { %v1102_v62 = vpop.f32.mrf.mxu2 }
 0x155   : > { %v1103_v7 = vadd.f32 %v1557_v48, %v1102_v62 }
 0x157   : > { %1142 = vst [vmem:[%s1982_s13] sm:$0xff] %v1103_v7 }
 0x15c   : > { %v1104_v49 = vpop.f32.mrf.mxu2 }
 0x15d   : > { %v1105_v8 = vadd.f32 %v1557_v48, %v1104_v49 }
 0x15f   : > { %1143 = vst [vmem:[%s1982_s13 + $0x8] sm:$0xff] %v1105_v8 }
 0x164   : > { %v1107_v9 = vpop.f32.mrf.mxu2 }
 0x165   : > { %v1108_v10 = vadd.f32 %v1557_v48, %v1107_v9 }
 0x167   : > { %1144 = vst [vmem:[%s1982_s13 + $0x10] sm:$0xff] %v1108_v10 }
 0x16c   : > { %v1109_v12 = vpop.f32.mrf.mxu2 }
 0x16d   : > { %v1110_v13 = vadd.f32 %v1557_v48, %v1109_v12 }
 0x16f   : > { %1145 = vst [vmem:[%s1982_s13 + $0x18] sm:$0xff] %v1110_v13 }
 0x174   : > { %v1112_v14 = vpop.f32.mrf.mxu2 }
 0x175   : > { %v1113_v15 = vadd.f32 %v1557_v48, %v1112_v14 }
 0x177   : > { %1146 = vst [vmem:[%s1982_s13 + $0x20] sm:$0xff] %v1113_v15 }
 0x179   : > { %v1132_v16 = vpop.f32.mrf.mxu3 }
 0x17a   : > { %v1133_v17 = vadd.f32 %v1557_v48, %v1132_v16 }
 0x17c   : > { %1154 = vst [vmem:[%s1982_s13 + $0x60] sm:$0xff] %v1133_v17  ;;  %v1114_v18 = vpop.f32.mrf.mxu2 }
 0x17d   : > { %v1115_v56 = vadd.f32 %v1557_v48, %v1114_v18 }
 0x17f   : > { %1147 = vst [vmem:[%s1982_s13 + $0x28] sm:$0xff] %v1115_v56 }
 0x181   : > { %v1134_v19 = vpop.f32.mrf.mxu3 }
 0x182   : > { %v1135_v20 = vadd.f32 %v1557_v48, %v1134_v19 }
 0x184   : > { %1155 = vst [vmem:[%s1982_s13 + $0x68] sm:$0xff] %v1135_v20  ;;  %v1117_v21 = vpop.f32.mrf.mxu2 }
 0x185   : > { %v1118_v22 = vadd.f32 %v1557_v48, %v1117_v21 }
 0x187   : > { %1148 = vst [vmem:[%s1982_s13 + $0x30] sm:$0xff] %v1118_v22 }
 0x189   : > { %v1137_v23 = vpop.f32.mrf.mxu3 }
 0x18a   : > { %v1138_v25 = vadd.f32 %v1557_v48, %v1137_v23 }
 0x18c   : > { %1156 = vst [vmem:[%s1982_s13 + $0x70] sm:$0xff] %v1138_v25  ;;  %v1119_v26 = vpop.f32.mrf.mxu2 }
 0x18d   : > { %v1120_v27 = vadd.f32 %v1557_v48, %v1119_v26 }
 0x18f   : > { %1149 = vst [vmem:[%s1982_s13 + $0x38] sm:$0xff] %v1120_v27 }
 0x191   : > { %v1139_v28 = vpop.f32.mrf.mxu3 }
 0x192   : > { %v1140_v29 = vadd.f32 %v1557_v48, %v1139_v28 }
 0x194   : > { %1157 = vst [vmem:[%s1982_s13 + $0x78] sm:$0xff] %v1140_v29  ;;  %v1122_v30 = vpop.f32.mrf.mxu2 }
 0x195   : > { %v1123_v32 = vadd.f32 %v1557_v48, %v1122_v30 }
 0x197   : > { %1150 = vst [vmem:[%s1982_s13 + $0x40] sm:$0xff] %v1123_v32 }
 0x19c   : > { %v1124_v31 = vpop.f32.mrf.mxu2 }
 0x19d   : > { %v1125_v24 = vadd.f32 %v1557_v48, %v1124_v31 }
 0x19f   : > { %1151 = vst [vmem:[%s1982_s13 + $0x48] sm:$0xff] %v1125_v24 }
 0x1a4   : > { %v1127_v33 = vpop.f32.mrf.mxu2 }
 0x1a5   : > { %v1128_v35 = vadd.f32 %v1557_v48, %v1127_v33 }
 0x1a7   : > { %1152 = vst [vmem:[%s1982_s13 + $0x50] sm:$0xff] %v1128_v35 }
 0x1ac   : > { %v1129_v36 = vpop.f32.mrf.mxu2 }
 0x1ad   : > { %v1130_v37 = vadd.f32 %v1557_v48, %v1129_v36 }
 0x1af   : > { %1153 = vst [vmem:[%s1982_s13 + $0x58] sm:$0xff] %v1130_v37 }
 0x1b0   : > { %1585 = shalt.err (!%p1582_p6)
}
 0x1b1   : > { %s1641_s18 = smov 128   ;;  %s1642_s13 = smov 8  }
 0x1b2   : > { %1494 = dma.vmem_to_hbm [thread:$0]  (%p1718_p4), %s1172_s20, 2048, %s1174_s16, %s1159_s28, %s1641_s18, %s1641_s18, %s1642_s13  }
 0x1b3 PF: > { %p1500_p7 = scmp.ge.s32.totalorder %s1636_s26, 2  ;;  %s1188_s17 = sand.u32 1, %s1616_s21  }
 0x1b4   : > { %s1189_s15 = scalar_lea.sflag [#allocation4], %s1188_s17 }
 0x1b5   : > { %p1497_p9 = pnand %p1500_p7, %p1725_p8 }
 0x1b7   : > { %p1498_p10 = pneg %p1497_p9 }
 0x1b9   : > { %1611 = dma.done.wait (%p1498_p10), %s1189_s15, 2048  }
 0x1ba   : > { %1613 = vsyncadd (%p1498_p10), %s1189_s15, 4294965248  ;;  %s19_s26 = sadd.s32 1, %s1636_s26   ;;  %s2048_s21 = smov %s1620_s22 }
 0x1bb   : > { %p16_p11 = scmp.ge.s32.totalorder %s19_s26, 4   ;;  %s2049_s22 = smov %s1624_s23 }
 0x1bc   : > { %s2050_s23 = smov %s1731_s10  ;;  %s2051_s24 = smov %s1632_s25 }
 0x1bd   : > { %s2052_s25 = smov %s2054_s29  ;;  %18 = sbr.rel (!%p16_p11) target bundleno = 4 (0x4), region = 96 }
 0x1c2   :  { %1195 = vsyncpa [#allocation4], 1 }
 0x1c3   :  { %1197 = vsyncpa [#allocation4 + $0x1], 1 }

</bundles_post_ra>
